<compile_context>
chip_gen: v7x
topology: tpu7x:2x2x1
jax: 0.10.0
libtpu: 0.0.40
codegen_flags: <defaults>
</compile_context>

<pallas_src>
import jax
import jax.numpy as jnp
from jax import lax
from jax.experimental import pallas as pl
from jax.experimental.pallas import tpu as pltpu


def _round_up(x, m):
    return ((x + m - 1) // m) * m


# ----------------------------------------------------------------- fused path
def _tpc_kernel_fused(prev_z_ref, wr_ref, wout_ref, pred_z_ref, pred_x_ref):
    # tanh in f32 (EUP), matmuls in the weights' dtype with f32 accumulation.
    h = jnp.tanh(prev_z_ref[...].astype(jnp.float32)).astype(wr_ref.dtype)
    pz = lax.dot_general(
        h, wr_ref[...],
        dimension_numbers=(((1,), (1,)), ((), ())),   # x @ Wr.T, (out,in) layout
        preferred_element_type=jnp.float32)
    pred_z_ref[...] = pz.astype(pred_z_ref.dtype)

    t = jnp.tanh(pz).astype(wout_ref.dtype)
    pred_x_ref[...] = lax.dot_general(
        t, wout_ref[...],
        dimension_numbers=(((1,), (1,)), ((), ())),   # y @ Wout.T
        preferred_element_type=jnp.float32).astype(pred_x_ref.dtype)


# ----------------------------------------------------------------- tiled path
def _tpc_kernel_tiled(prev_z_ref, wr_ref, wout_ref, pred_z_ref, pred_x_ref,
                      h_ref, acc_ref):
    j = pl.program_id(1)

    @pl.when(j == 0)
    def _init():
        # tanh once per batch tile, in f32 (EUP), cast to the MXU operand dtype.
        h_ref[...] = jnp.tanh(prev_z_ref[...].astype(jnp.float32)).astype(h_ref.dtype)
        acc_ref[...] = jnp.zeros_like(acc_ref)

    # First matmul: pred_z[:, j-chunk] = tanh(prev_z) @ Wr[j-chunk, :].T
    pz = lax.dot_general(
        h_ref[...], wr_ref[...],
        dimension_numbers=(((1,), (1,)), ((), ())),
        preferred_element_type=jnp.float32)
    pred_z_ref[...] = pz.astype(pred_z_ref.dtype)

    # Second matmul (K-accumulated over the same j axis):
    #   pred_x += tanh(pred_z[:, j-chunk]) @ Wout[:, j-chunk].T
    t = jnp.tanh(pz).astype(wout_ref.dtype)
    acc_ref[...] += lax.dot_general(
        t, wout_ref[...],
        dimension_numbers=(((1,), (1,)), ((), ())),
        preferred_element_type=jnp.float32)

    @pl.when(j == pl.num_programs(1) - 1)
    def _finalize():
        pred_x_ref[...] = acc_ref[...].astype(pred_x_ref.dtype)


def tpc_forward(prev_z, wr, wout, *, block_b=None, block_h=None):
    """prev_z: (B, H); wr: (H, H) PyTorch (out, in); wout: (O, H) PyTorch (out, in)."""
    B, H = prev_z.shape
    assert wr.shape == (H, H)
    O, Hw = wout.shape
    assert Hw == H

    out_dtype = prev_z.dtype
    w_dtype = wr.dtype
    in_bytes = jnp.dtype(prev_z.dtype).itemsize
    w_bytes = jnp.dtype(w_dtype).itemsize
    o_bytes = jnp.dtype(out_dtype).itemsize

    # Lane/sublane-dense padded sizes.
    Bp = _round_up(B, 8)
    Hp = _round_up(H, 128)
    Op = _round_up(O, 128)

    # Batch tile: prefer >=2 tiles (megacore) with a bounded resident tile.
    if block_b is None:
        row_bytes = Hp * max(in_bytes, w_bytes)
        cap = 8 * 1024 * 1024
        for cand in (512, 256, 128, 64, 32, 16, 8):
            if Bp % cand == 0 and Bp // cand >= 2 and cand * row_bytes <= cap:
                block_b = cand
                break
        else:
            block_b = Bp  # tiny batch: single tile is all we can do
    assert Bp % block_b == 0 and block_b % 8 == 0
    n_b = Bp // block_b

    # Hidden tile (N of the first matmul == K of the second matmul).
    if block_h is None:
        if Hp <= 1024:
            block_h = Hp          # fused path: whole Wr/Wout resident
        elif Hp % 512 == 0:
            block_h = 512
        elif Hp % 256 == 0:
            block_h = 256
        else:
            block_h = 128
    assert Hp % block_h == 0 and block_h % 128 == 0
    n_j = Hp // block_h

    # Zero-pad to tile-friendly shapes (exact: tanh(0)=0 and 0 * w = 0).
    prev_z_p = prev_z if (Bp, Hp) == (B, H) else jnp.pad(
        prev_z, ((0, Bp - B), (0, Hp - H)))
    wr_p = wr if Hp == H else jnp.pad(wr, ((0, Hp - H), (0, Hp - H)))
    wout_p = wout if (Op, Hp) == (O, H) else jnp.pad(
        wout, ((0, Op - O), (0, Hp - H)))

    cost = pl.CostEstimate(
        flops=2 * B * H * H + 2 * B * H * O,
        transcendentals=2 * B * H,
        bytes_accessed=(prev_z_p.size * in_bytes
                        + wr_p.size * w_bytes + wout_p.size * w_bytes
                        + (Bp * Hp + Bp * Op) * o_bytes),
    )

    out_shape = (
        jax.ShapeDtypeStruct((Bp, Hp), out_dtype),
        jax.ShapeDtypeStruct((Bp, Op), out_dtype),
    )

    if n_j == 1:
        # ---------------- fused path: one matmul pair per batch tile ----------
        vmem_est = (2 * block_b * Hp * in_bytes       # prev_z tiles
                    + Hp * Hp * w_bytes               # Wr (grid-invariant)
                    + Op * Hp * w_bytes               # Wout (grid-invariant)
                    + 2 * block_b * Hp * o_bytes      # pred_z tiles
                    + 2 * block_b * Op * o_bytes)     # pred_x tiles
        vmem_limit = int(min(max(2 * vmem_est, 32 * 1024 * 1024),
                             48 * 1024 * 1024))
        pred_z_p, pred_x_p = pl.pallas_call(
            _tpc_kernel_fused,
            out_shape=out_shape,
            grid_spec=pltpu.PrefetchScalarGridSpec(
                num_scalar_prefetch=0,
                grid=(n_b,),
                in_specs=[
                    pl.BlockSpec((block_b, Hp), lambda i: (i, 0)),  # prev_z
                    pl.BlockSpec((Hp, Hp), lambda i: (0, 0)),       # Wr (out,in)
                    pl.BlockSpec((Op, Hp), lambda i: (0, 0)),       # Wout (out,in)
                ],
                out_specs=[
                    pl.BlockSpec((block_b, Hp), lambda i: (i, 0)),  # pred_z
                    pl.BlockSpec((block_b, Op), lambda i: (i, 0)),  # pred_x
                ],
            ),
            compiler_params=pltpu.CompilerParams(
                dimension_semantics=("parallel",),
                vmem_limit_bytes=vmem_limit,
            ),
            cost_estimate=cost,
        )(prev_z_p, wr_p, wout_p)
    else:
        # ---------------- tiled path: hidden axis doubles as N then K ---------
        vmem_est = (2 * block_b * Hp * in_bytes          # prev_z tile
                    + 2 * block_h * Hp * w_bytes         # Wr tile
                    + 2 * Op * block_h * w_bytes         # Wout tile
                    + 2 * block_b * block_h * o_bytes    # pred_z tile
                    + 2 * block_b * Op * o_bytes         # pred_x tile
                    + block_b * Hp * w_bytes             # h scratch
                    + block_b * Op * 4)                  # f32 accumulator
        vmem_limit = int(min(max(2 * vmem_est, 32 * 1024 * 1024),
                             48 * 1024 * 1024))
        pred_z_p, pred_x_p = pl.pallas_call(
            _tpc_kernel_tiled,
            out_shape=out_shape,
            grid_spec=pltpu.PrefetchScalarGridSpec(
                num_scalar_prefetch=0,
                grid=(n_b, n_j),
                in_specs=[
                    pl.BlockSpec((block_b, Hp), lambda i, j: (i, 0)),   # prev_z
                    pl.BlockSpec((block_h, Hp), lambda i, j: (j, 0)),   # Wr rows
                    pl.BlockSpec((Op, block_h), lambda i, j: (0, j)),   # Wout cols
                ],
                out_specs=[
                    pl.BlockSpec((block_b, block_h), lambda i, j: (i, j)),  # pred_z
                    pl.BlockSpec((block_b, Op), lambda i, j: (i, 0)),       # pred_x
                ],
                scratch_shapes=[
                    pltpu.VMEM((block_b, Hp), w_dtype),       # tanh(prev_z)
                    pltpu.VMEM((block_b, Op), jnp.float32),   # pred_x accumulator
                ],
            ),
            compiler_params=pltpu.CompilerParams(
                dimension_semantics=("parallel", "arbitrary"),
                vmem_limit_bytes=vmem_limit,
            ),
            cost_estimate=cost,
        )(prev_z_p, wr_p, wout_p)

    return pred_z_p[:B, :H], pred_x_p[:B, :O]


def _reference_forward(prev_z, wr, wout):
    pred_z = jnp.tanh(prev_z) @ wr.T
    pred_x = jnp.tanh(pred_z) @ wout.T
    return pred_z, pred_x


if __name__ == "__main__":
    # Small shapes consistent with the module: batch=8, hidden=32, output=16.
    B, H, O = 8, 32, 16
    key = jax.random.PRNGKey(0)
    k1, k2, k3 = jax.random.split(key, 3)

    bound = 1.0 / (H ** 0.5)
    wr = jax.random.uniform(k1, (H, H), jnp.float32, -bound, bound)     # (out, in)
    wout = jax.random.uniform(k2, (O, H), jnp.float32, -bound, bound)   # (out, in)
    prev_z = jax.random.normal(k3, (B, H), jnp.float32)

    pred_z, pred_x = tpc_forward(prev_z, wr, wout)
    jax.block_until_ready((pred_z, pred_x))

    ref_z, ref_x = _reference_forward(prev_z, wr, wout)
    assert jnp.allclose(pred_z, ref_z, atol=1e-5, rtol=1e-5)
    assert jnp.allclose(pred_x, ref_x, atol=1e-5, rtol=1e-5)

    print("KERNEL_OK")
</pallas_src>

<mosaic_0001>
module attributes {stable_mosaic.version = 11 : i64} {
  func.func @_tpc_kernel_fused(%arg0: i32, %arg1: memref<8x128xf32, #tpu.memory_space<vmem>>, %arg2: memref<128x128xf32, #tpu.memory_space<vmem>>, %arg3: memref<128x128xf32, #tpu.memory_space<vmem>>, %arg4: memref<8x128xf32, #tpu.memory_space<vmem>>, %arg5: memref<8x128xf32, #tpu.memory_space<vmem>>) attributes {dimension_semantics = [#tpu.dimension_semantics<parallel>], iteration_bounds = array<i64: 1>, scalar_prefetch = 0 : i64, scratch_operands = 0 : i64, tpu.core_type = #tpu.core_type<tc>, window_params = [{transform_indices = @transform_0, window_bounds = array<i64: 8, 128>}, {pipeline_mode = #tpu.pipeline_mode<synchronous>, transform_indices = @transform_1, window_bounds = array<i64: 128, 128>}, {pipeline_mode = #tpu.pipeline_mode<synchronous>, transform_indices = @transform_2, window_bounds = array<i64: 128, 128>}, {transform_indices = @transform_3, window_bounds = array<i64: 8, 128>}, {transform_indices = @transform_4, window_bounds = array<i64: 8, 128>}]} {
    %c0 = arith.constant 0 : index
    %c0_0 = arith.constant 0 : index
    %0 = vector.load %arg1[%c0, %c0_0] : memref<8x128xf32, #tpu.memory_space<vmem>>, vector<8x128xf32>
    %1 = math.tanh %0 : vector<8x128xf32>
    %c0_1 = arith.constant 0 : index
    %c0_2 = arith.constant 0 : index
    %2 = vector.load %arg2[%c0_1, %c0_2] : memref<128x128xf32, #tpu.memory_space<vmem>>, vector<128x128xf32>
    %cst = arith.constant dense<0.000000e+00> : vector<8x128xf32>
    %3 = tpu.matmul %1, %2, %cst {dimension_numbers = #tpu.dot_dimension_numbers<[1], [1], [0], [0], [0, 0, 1, 0], [], []>} : vector<8x128xf32>, vector<128x128xf32>, vector<8x128xf32> -> vector<8x128xf32>
    %c0_3 = arith.constant 0 : index
    %c0_4 = arith.constant 0 : index
    %4 = vector.load %arg4[%c0_3, %c0_4] : memref<8x128xf32, #tpu.memory_space<vmem>>, vector<8x128xf32>
    tpu.vector_store %arg4[%c0_3, %c0_4], %3 {strides = array<i32>} : memref<8x128xf32, #tpu.memory_space<vmem>>, vector<8x128xf32>,
    %5 = math.tanh %3 : vector<8x128xf32>
    %c0_5 = arith.constant 0 : index
    %c0_6 = arith.constant 0 : index
    %6 = vector.load %arg3[%c0_5, %c0_6] : memref<128x128xf32, #tpu.memory_space<vmem>>, vector<128x128xf32>
    %cst_7 = arith.constant dense<0.000000e+00> : vector<8x128xf32>
    %7 = tpu.matmul %5, %6, %cst_7 {dimension_numbers = #tpu.dot_dimension_numbers<[1], [1], [0], [0], [0, 0, 1, 0], [], []>} : vector<8x128xf32>, vector<128x128xf32>, vector<8x128xf32> -> vector<8x128xf32>
    %c0_8 = arith.constant 0 : index
    %c0_9 = arith.constant 0 : index
    %8 = vector.load %arg5[%c0_8, %c0_9] : memref<8x128xf32, #tpu.memory_space<vmem>>, vector<8x128xf32>
    tpu.vector_store %arg5[%c0_8, %c0_9], %7 {strides = array<i32>} : memref<8x128xf32, #tpu.memory_space<vmem>>, vector<8x128xf32>,
    return
  }
  func.func @transform_0(%arg0: i32) -> (i32, i32) {
    %c0_i32 = arith.constant 0 : i32
    %c0_i32_0 = arith.constant 0 : i32
    return %arg0, %c0_i32 : i32, i32
  }
  func.func @transform_1(%arg0: i32) -> (i32, i32) {
    %c0_i32 = arith.constant 0 : i32
    %c0_i32_0 = arith.constant 0 : i32
    %c0_i32_1 = arith.constant 0 : i32
    return %c0_i32, %c0_i32_0 : i32, i32
  }
  func.func @transform_2(%arg0: i32) -> (i32, i32) {
    %c0_i32 = arith.constant 0 : i32
    %c0_i32_0 = arith.constant 0 : i32
    %c0_i32_1 = arith.constant 0 : i32
    return %c0_i32, %c0_i32_0 : i32, i32
  }
  func.func @transform_3(%arg0: i32) -> (i32, i32) {
    %c0_i32 = arith.constant 0 : i32
    %c0_i32_0 = arith.constant 0 : i32
    return %arg0, %c0_i32 : i32, i32
  }
  func.func @transform_4(%arg0: i32) -> (i32, i32) {
    %c0_i32 = arith.constant 0 : i32
    %c0_i32_0 = arith.constant 0 : i32
    return %arg0, %c0_i32 : i32, i32
  }
}

</mosaic_0001>

<bundles_post_ra>
// kernel: tpu_custom_call.1
= control target key start
LH: loop header
LB: loop body
LE: loop exit
PB: predicated region body
PF: predicated region fallthrough
CT: control target
= control target key end

     0   :  { %10 = vsyncpa [#allocation3], 0  ;;  %s665_s0 = inlined_call_operand.hbm [shape: f32[8,128], index: 0, kind: input, shape index: {}]   ;;  %s666_s1 = inlined_call_operand.hbm [shape: f32[128,128], index: 1, kind: input, shape index: {}]   ;;  %s667_s2 = inlined_call_operand.hbm [shape: f32[128,128], index: 2, kind: input, shape index: {}]   ;;  %s668_s3 = inlined_call_operand.hbm [shape: f32[8,128], index: 3, kind: output, shape index: {0}]   ;;  %s669_s4 = inlined_call_operand.hbm [shape: f32[8,128], index: 4, kind: output, shape index: {1}]  }
   0x1   :  { %11 = vsyncpa [#allocation6], 0 }
   0x2   :  { %12 = vsyncpa [#allocation4], 0 }
   0x3   :  { %13 = vsyncpa [#allocation10], 0  ;;  %s548_s15 = smov [#allocation5]   ;;  %s430_s19 = scalar_lea.hbm %s666_s1, 2048 }
   0x4   :  { %s29_s16 = sshll.u32 %s548_s15, 4  ;;  %p431_p0 = scmp.ne.s32.totalorder %s666_s1, %s430_s19  ;;  %s30_s16 = int_to_ptr.vmem [resolvable:$true] %s29_s16 }
   0x5   :  { %p434_p1 = scmp.lt.u32.totalorder %s430_s19, %s666_s1 }
   0x7   :  { %p436_p2 = pnand %p434_p1, %p431_p0 }
   0x9   :  { %439 = shalt.err (!%p436_p2)
}
   0xa   :  { %s440_s24 = scalar_lea.vmem %s30_s16, 2048  ;;  %p445_p4 = scmp.lt.s32.totalorder %s30_s16, %s30_s16 }
   0xb   :  { %p441_p3 = scmp.ne.s32.totalorder %s30_s16, %s440_s24  ;;  %p446_p5 = scmp.lt.s32.totalorder %s440_s24, %s440_s24 }
   0xd   :  { %p447_p6 = por %p446_p5, %p445_p4 }
   0xf   :  { %p448_p7 = pnand %p447_p6, %p441_p3 }
  0x11   :  { %451 = shalt.err (!%p448_p7)
}
  0x12   :  { %s549_s25 = smov 128   ;;  %s550_s26 = smov 8  }
  0x13   :  { %35 = dma.hbm_to_vmem [thread:$0]  %s666_s1, 2048, %s30_s16, [#allocation6], %s549_s25, %s549_s25, %s550_s26  }
  0x14   :  { %s551_s29 = smov [#allocation2]   ;;  %s552_s5 = smov [#allocation7]  }
  0x15   :  { %s20_s30 = sshll.u32 %s551_s29, 4  ;;  %s41_s6 = sshll.u32 %s552_s5, 4  ;;  %s21_s30 = int_to_ptr.vmem [resolvable:$true] %s20_s30  ;;  %s42_s6 = int_to_ptr.vmem [resolvable:$true] %s41_s6 }
  0x16   :  { %s452_s9 = scalar_lea.hbm %s665_s0, 128 }
  0x17   :  { %p453_p8 = scmp.ne.s32.totalorder %s665_s0, %s452_s9  ;;  %p456_p9 = scmp.lt.u32.totalorder %s452_s9, %s665_s0 }
  0x19   :  { %p458_p10 = pnand %p456_p9, %p453_p8 }
  0x1b   :  { %461 = shalt.err (!%p458_p10)
}
  0x1c   :  { %s462_s1 = scalar_lea.vmem %s21_s30, 128  ;;  %p467_p12 = scmp.lt.s32.totalorder %s21_s30, %s21_s30 }
  0x1d   :  { %p463_p11 = scmp.ne.s32.totalorder %s21_s30, %s462_s1  ;;  %p468_p13 = scmp.lt.s32.totalorder %s462_s1, %s462_s1 }
  0x1f   :  { %p469_p0 = por %p468_p13, %p467_p12 }
  0x21   :  { %p470_p1 = pnand %p469_p0, %p463_p11 }
  0x23   :  { %473 = shalt.err (!%p470_p1)
}
  0x24   :  { %23 = dma.hbm_to_vmem [thread:$0]  %s665_s0, 128, %s21_s30, [#allocation3]  }
  0x25   :  { %s474_s18 = scalar_lea.hbm %s667_s2, 2048 }
  0x26   :  { %p475_p2 = scmp.ne.s32.totalorder %s667_s2, %s474_s18  ;;  %p478_p3 = scmp.lt.u32.totalorder %s474_s18, %s667_s2 }
  0x28   :  { %p480_p4 = pnand %p478_p3, %p475_p2 }
  0x2a   :  { %483 = shalt.err (!%p480_p4)
}
  0x2b   :  { %s484_s23 = scalar_lea.vmem %s42_s6, 2048  ;;  %p489_p6 = scmp.lt.s32.totalorder %s42_s6, %s42_s6 }
  0x2c   :  { %p485_p5 = scmp.ne.s32.totalorder %s42_s6, %s484_s23  ;;  %p490_p7 = scmp.lt.s32.totalorder %s484_s23, %s484_s23 }
  0x2e   :  { %p491_p8 = por %p490_p7, %p489_p6 }
  0x30   :  { %p492_p9 = pnand %p491_p8, %p485_p5 }
  0x32   :  { %495 = shalt.err (!%p492_p9)
}
  0x33   :  { %47 = dma.hbm_to_vmem [thread:$0]  %s667_s2, 2048, %s42_s6, [#allocation6], %s549_s25, %s549_s25, %s550_s26  }
  0x34   :  { %540 = dma.done.wait [#allocation3], 128  }
  0x35   :  { %541 = vsyncadd [#allocation3], 4294967168 }
  0x36   :  { %542 = dma.done.wait [#allocation6], 4096  }
  0x37   :  { %543 = vsyncadd [#allocation6], 4294963200  ;;  %v553_v0 = vmov 0.0|0.0   ;;  %vm554_vm0 = vmmov 0   ;;  %v555_v1 = vmov 0.0   ;;  %v59_v2 = vld [vmem:[#allocation5] sm:$0xff] }
  0x38   :  { %368 = vmatprep.subr.bf16.mxu0 %v553_v0  ;;  %330 = vmatprep.mubr.msk.f32.mxu0 %vm554_vm0, %v555_v1  ;;  %v60_v3 = vld [vmem:[#allocation5 + $0x8] sm:$0xff]  ;;  %v61_v5 = vld [vmem:[#allocation5 + $0x10] sm:$0xff]  ;;  %v62_v6 = vld [vmem:[#allocation5 + $0x18] sm:$0xff]  ;;  %s556_s2 = smov [#allocation8]  }
  0x39   :  { %392 = vmatprep.subr.bf16.mxu1 %v553_v0  ;;  %365 = vmatprep.mubr.msk.f32.mxu1 %vm554_vm0, %v555_v1  ;;  %v369_v4 = vpack.c.bf16 %v60_v3, %v59_v2  ;;  %v147_v7 = vld [vmem:[#allocation7] sm:$0xff]  ;;  %v148_v8 = vld [vmem:[#allocation7 + $0x8] sm:$0xff]  ;;  %v372_v9 = vpack.c.bf16 %v62_v6, %v61_v5  ;;  %v149_v11 = vld [vmem:[#allocation7 + $0x10] sm:$0xff]  ;;  %s240_s25 = sshll.u32 %s556_s2, 4  ;;  %s241_s25 = int_to_ptr.vmem [resolvable:$true] %s240_s25 }
  0x3a   :  { %v393_v10 = vpack.c.bf16 %v148_v8, %v147_v7  ;;  %v150_v12 = vld [vmem:[#allocation7 + $0x18] sm:$0xff]  ;;  %v63_v13 = vld [vmem:[#allocation5 + $0x20] sm:$0xff]  ;;  %v64_v14 = vld [vmem:[#allocation5 + $0x28] sm:$0xff]  ;;  %s496_s26 = scalar_lea.vmem %s241_s25, 128  ;;  %p501_p11 = scmp.lt.s32.totalorder %s241_s25, %s241_s25 }
  0x3b   :  { %370 = vmatpush3.bf16.xpose.msra.mxu0 %v369_v4  ;;  %v396_v15 = vpack.c.bf16 %v150_v12, %v149_v11  ;;  %v375_v16 = vpack.c.bf16 %v64_v14, %v63_v13  ;;  %v151_v17 = vld [vmem:[#allocation7 + $0x20] sm:$0xff]  ;;  %v152_v18 = vld [vmem:[#allocation7 + $0x28] sm:$0xff]  ;;  %v65_v19 = vld [vmem:[#allocation5 + $0x30] sm:$0xff]  ;;  %p497_p10 = scmp.ne.s32.totalorder %s241_s25, %s496_s26  ;;  %p502_p12 = scmp.lt.s32.totalorder %s496_s26, %s496_s26 }
  0x3c   :  { %371 = vmatprep.subr.bf16.mxu0 %v553_v0  ;;  %394 = vmatpush3.bf16.xpose.msra.mxu1 %v393_v10  ;;  %v66_v20 = vld [vmem:[#allocation5 + $0x38] sm:$0xff]  ;;  %v399_v21 = vpack.c.bf16 %v152_v18, %v151_v17  ;;  %v153_v23 = vld [vmem:[#allocation7 + $0x30] sm:$0xff]  ;;  %v67_v25 = vld [vmem:[#allocation5 + $0x40] sm:$0xff] }
  0x3d   :  { %395 = vmatprep.subr.bf16.mxu1 %v553_v0  ;;  %v378_v22 = vpack.c.bf16 %v66_v20, %v65_v19  ;;  %v154_v24 = vld [vmem:[#allocation7 + $0x38] sm:$0xff]  ;;  %v68_v26 = vld [vmem:[#allocation5 + $0x48] sm:$0xff]  ;;  %v155_v29 = vld [vmem:[#allocation7 + $0x40] sm:$0xff]  ;;  %p503_p13 = por %p502_p12, %p501_p11 }
  0x3e   :  { %v402_v27 = vpack.c.bf16 %v154_v24, %v153_v23  ;;  %v381_v28 = vpack.c.bf16 %v68_v26, %v67_v25  ;;  %v156_v30 = vld [vmem:[#allocation7 + $0x48] sm:$0xff]  ;;  %v69_v31 = vld [vmem:[#allocation5 + $0x50] sm:$0xff]  ;;  %v70_v32 = vld [vmem:[#allocation5 + $0x58] sm:$0xff] }
  0x3f   :  { %v405_v33 = vpack.c.bf16 %v156_v30, %v155_v29  ;;  %v384_v34 = vpack.c.bf16 %v70_v32, %v69_v31  ;;  %v157_v35 = vld [vmem:[#allocation7 + $0x50] sm:$0xff]  ;;  %v158_v36 = vld [vmem:[#allocation7 + $0x58] sm:$0xff]  ;;  %v71_v37 = vld [vmem:[#allocation5 + $0x60] sm:$0xff]  ;;  %p504_p0 = pnand %p503_p13, %p497_p10 }
  0x40   :  { %v72_v38 = vld [vmem:[#allocation5 + $0x68] sm:$0xff]  ;;  %v408_v39 = vpack.c.bf16 %v158_v36, %v157_v35  ;;  %v57_v41 = vld [vmem:[#allocation2] sm:$0xff]  ;;  %v159_v42 = vld [vmem:[#allocation7 + $0x60] sm:$0xff] }
  0x41   :  { %v387_v40 = vpack.c.bf16 %v72_v38, %v71_v37  ;;  %v160_v43 = vld [vmem:[#allocation7 + $0x68] sm:$0xff]  ;;  %v73_v44 = vld [vmem:[#allocation5 + $0x70] sm:$0xff]  ;;  %v74_v45 = vld [vmem:[#allocation5 + $0x78] sm:$0xff]  ;;  %426 = vtanh.f32 %v57_v41 }
  0x42   :  { %v411_v46 = vpack.c.bf16 %v160_v43, %v159_v42  ;;  %v390_v47 = vpack.c.bf16 %v74_v45, %v73_v44  ;;  %v161_v49 = vld [vmem:[#allocation7 + $0x70] sm:$0xff]  ;;  %v162_v50 = vld [vmem:[#allocation7 + $0x78] sm:$0xff] }
  0x43   :  { %373 = vmatpush3.bf16.xpose.msra.mxu0 %v372_v9  ;;  %v414_v51 = vpack.c.bf16 %v162_v50, %v161_v49 }
  0x44   :  { %374 = vmatprep.subr.bf16.mxu0 %v553_v0  ;;  %397 = vmatpush3.bf16.xpose.msra.mxu1 %v396_v15 }
  0x45   :  { %398 = vmatprep.subr.bf16.mxu1 %v553_v0 }
  0x4b   :  { %376 = vmatpush3.bf16.xpose.msra.mxu0 %v375_v16  ;;  %v427_v48 = vpop.eup %426 }
  0x4c   :  { %377 = vmatprep.subr.bf16.mxu0 %v553_v0  ;;  %400 = vmatpush3.bf16.xpose.msra.mxu1 %v399_v21 }
  0x4d   :  { %401 = vmatprep.subr.bf16.mxu1 %v553_v0 }
  0x53   :  { %379 = vmatpush3.bf16.xpose.msra.mxu0 %v378_v22 }
  0x54   :  { %380 = vmatprep.subr.bf16.mxu0 %v553_v0  ;;  %403 = vmatpush3.bf16.xpose.msra.mxu1 %v402_v27 }
  0x55   :  { %404 = vmatprep.subr.bf16.mxu1 %v553_v0 }
  0x5b   :  { %382 = vmatpush3.bf16.xpose.msra.mxu0 %v381_v28 }
  0x5c   :  { %383 = vmatprep.subr.bf16.mxu0 %v553_v0  ;;  %406 = vmatpush3.bf16.xpose.msra.mxu1 %v405_v33 }
  0x5d   :  { %407 = vmatprep.subr.bf16.mxu1 %v553_v0 }
  0x63   :  { %385 = vmatpush3.bf16.xpose.msra.mxu0 %v384_v34 }
  0x64   :  { %386 = vmatprep.subr.bf16.mxu0 %v553_v0  ;;  %409 = vmatpush3.bf16.xpose.msra.mxu1 %v408_v39 }
  0x65   :  { %410 = vmatprep.subr.bf16.mxu1 %v553_v0 }
  0x6b   :  { %388 = vmatpush3.bf16.xpose.msra.mxu0 %v387_v40 }
  0x6c   :  { %389 = vmatprep.subr.bf16.mxu0 %v553_v0  ;;  %412 = vmatpush3.bf16.xpose.msra.mxu1 %v411_v46 }
  0x6d   :  { %413 = vmatprep.subr.bf16.mxu1 %v553_v0 }
  0x73   :  { %391 = vmatpush3.bf16.xpose.msra.mxu0 %v390_v47 }
  0x74   :  { %415 = vmatpush3.bf16.xpose.msra.mxu1 %v414_v51 }
  0x7a   :  { %331 = vmatmul.mubr.f32.vlgmr.msra.gmra.mrb[0].mxu0 %v427_v48 }
 0x14d   :  { %v141_v52 = vpop.f32.mrb[0].mxu0 }
 0x14e   :  { %428 = vtanh.f32 %v141_v52  ;;  %145 = vst [vmem:[#allocation8] sm:$0xff] %v141_v52  ;;  %v332_v53 = vpop.f32.mrb[1].mxu0 }
 0x158   :  { %v429_v54 = vpop.eup %428 }
 0x159   :  { %366 = vmatmul.mubr.f32.vlgmr.msra.gmra.mrb[0].mxu1 %v429_v54 }
 0x15a   :  { %507 = shalt.err (!%p504_p0)
}
 0x15b   :  { %s508_s29 = scalar_lea.hbm %s668_s3, 128 }
 0x15c   :  { %p509_p1 = scmp.ne.s32.totalorder %s668_s3, %s508_s29  ;;  %p512_p2 = scmp.lt.u32.totalorder %s508_s29, %s668_s3 }
 0x15e   :  { %p514_p3 = pnand %p512_p2, %p509_p1 }
 0x160   :  { %517 = shalt.err (!%p514_p3)
}
 0x161   :  { %243 = dma.vmem_to_hbm [thread:$0]  %s241_s25, 128, %s668_s3, [#allocation4]  }
 0x162   :  { %s557_s10 = smov [#allocation9]  }
 0x163   :  { %s250_s11 = sshll.u32 %s557_s10, 4  ;;  %s251_s11 = int_to_ptr.vmem [resolvable:$true] %s250_s11 }
 0x164   :  { %s518_s12 = scalar_lea.vmem %s251_s11, 128  ;;  %p523_p5 = scmp.lt.s32.totalorder %s251_s11, %s251_s11 }
 0x165   :  { %p519_p4 = scmp.ne.s32.totalorder %s251_s11, %s518_s12  ;;  %p524_p6 = scmp.lt.s32.totalorder %s518_s12, %s518_s12 }
 0x167   :  { %p525_p7 = por %p524_p6, %p523_p5 }
 0x169   :  { %p526_p8 = pnand %p525_p7, %p519_p4 }
 0x22c   :  { %v229_v55 = vpop.f32.mrb[0].mxu1 }
 0x22d   :  { %233 = vst [vmem:[#allocation9] sm:$0xff] %v229_v55  ;;  %v367_v56 = vpop.f32.mrb[1].mxu1 }
 0x22e   :  { %529 = shalt.err (!%p526_p8)
}
 0x22f   :  { %s530_s14 = scalar_lea.hbm %s669_s4, 128 }
 0x230   :  { %p531_p9 = scmp.ne.s32.totalorder %s669_s4, %s530_s14  ;;  %p534_p10 = scmp.lt.u32.totalorder %s530_s14, %s669_s4 }
 0x232   :  { %p536_p11 = pnand %p534_p10, %p531_p9 }
 0x234   :  { %539 = shalt.err (!%p536_p11)
}
 0x235   :  { %253 = dma.vmem_to_hbm [thread:$0]  %s251_s11, 128, %s669_s4, [#allocation10]  }
 0x236   :  { %544 = dma.done.wait [#allocation4], 128  }
 0x237   :  { %545 = vsyncadd [#allocation4], 4294967168 }
 0x238   :  { %546 = dma.done.wait [#allocation10], 128  }
 0x239   :  { %547 = vsyncadd [#allocation10], 4294967168 }
 0x23a   :  { %260 = vsyncpa [#allocation3], 1 }
 0x23b   :  { %261 = vsyncpa [#allocation6], 1 }
 0x23c   :  { %262 = vsyncpa [#allocation4], 1 }
 0x23d   :  { %263 = vsyncpa [#allocation10], 1 }

</bundles_post_ra>
